<compile_context>
chip_gen: v6e
topology: v6e:2x2x1
jax: 0.10.0
libtpu: 0.0.40
codegen_flags: <defaults>
</compile_context>

<pallas_src>
import jax
import jax.numpy as jnp
from jax.experimental import pallas as pl
from jax.experimental.pallas import tpu as pltpu


# ----------------------------------------------------------------------------
# pe table construction (vectorized replica of the PyTorch __init__ loops)
# ----------------------------------------------------------------------------
def build_positional_encoding(model_dim: int, max_seq_len: int) -> jnp.ndarray:
    """Returns pe of shape (max_seq_len, model_dim), matching the PyTorch buffer."""
    assert model_dim % 2 == 0, "model_dim must be even (PyTorch loop writes i and i+1)"
    pos = jnp.arange(max_seq_len, dtype=jnp.float32)[:, None]            # (S, 1)
    even_idx = jnp.arange(0, model_dim, 2, dtype=jnp.float32)[None, :]   # (1, D/2)
    # even column i:    sin(pos / 10000 ** (2*i / D))
    # odd  column i+1:  cos(pos / 10000 ** (2*(i+1) / D))
    div_even = jnp.power(10000.0, 2.0 * even_idx / model_dim)
    div_odd = jnp.power(10000.0, 2.0 * (even_idx + 1.0) / model_dim)
    pe_even = jnp.sin(pos / div_even)                                     # (S, D/2)
    pe_odd = jnp.cos(pos / div_odd)                                       # (S, D/2)
    # Interleave -> columns [even0, odd0, even1, odd1, ...]
    pe = jnp.stack([pe_even, pe_odd], axis=-1).reshape(max_seq_len, model_dim)
    return pe


# ----------------------------------------------------------------------------
# Pallas kernel: fused broadcast add (the whole forward pass)
# ----------------------------------------------------------------------------
def _pos_enc_kernel(x_ref, pe_ref, o_ref):
    # x_ref / o_ref: (1, tile_s, D) block for one batch element & seq tile.
    # pe_ref: (tile_s, D), VMEM-resident, broadcasts over the leading 1.
    o_ref[...] = (x_ref[...].astype(jnp.float32) + pe_ref[...]).astype(o_ref.dtype)


def _pick_seq_tile(S: int, D: int, itemsize: int, budget_bytes: int = 2 << 20) -> int:
    """Largest seq tile that (a) divides S, (b) is sublane-aligned (or == S),
    and (c) keeps one (tile_s, D) block under the VMEM budget (double-buffered
    in/out/pe blocks then stay well inside the default scoped VMEM limit)."""
    if S * D * itemsize <= budget_bytes:
        return S
    for t in range(S - 1, 0, -1):
        if S % t == 0 and t % 8 == 0 and t * D * itemsize <= budget_bytes:
            return t
    return S  # no aligned divisor fits: fall back to one full-S block


def positional_encoder_forward(x: jnp.ndarray, pe: jnp.ndarray) -> jnp.ndarray:
    """x: (B, S, D) with S == max_seq_len, D == model_dim; pe: (S, D) float32."""
    B, S, D = x.shape
    assert pe.shape == (S, D), f"pe shape {pe.shape} does not broadcast with x {x.shape}"
    tile_s = _pick_seq_tile(S, D, jnp.dtype(x.dtype).itemsize)
    grid = (S // tile_s, B)  # batch innermost -> pe tile reused across all B
    return pl.pallas_call(
        _pos_enc_kernel,
        out_shape=jax.ShapeDtypeStruct((B, S, D), x.dtype),
        grid=grid,
        in_specs=[
            pl.BlockSpec((1, tile_s, D), lambda s, b: (b, s, 0)),   # activations
            pl.BlockSpec((tile_s, D), lambda s, b: (s, 0)),         # pe: constant over b
        ],
        out_specs=pl.BlockSpec((1, tile_s, D), lambda s, b: (b, s, 0)),
        compiler_params=pltpu.CompilerParams(
            dimension_semantics=("parallel", "parallel"),           # v7x: split across TCs
        ),
    )(x, pe)


# ----------------------------------------------------------------------------
# Demo / correctness check
# ----------------------------------------------------------------------------
if __name__ == "__main__":
    key = jax.random.PRNGKey(0)
    B, max_seq_len, model_dim = 2, 64, 128   # small; D multiple of 128 -> lane-dense stores

    pe = build_positional_encoding(model_dim, max_seq_len)                # (S, D) f32
    x = jax.random.normal(key, (B, max_seq_len, model_dim), jnp.float32)  # (B, S, D)

    out = jax.jit(positional_encoder_forward)(x, pe)
    out = jax.block_until_ready(out)

    # Verify against the pure-JAX reference of the PyTorch forward (x + pe[None]).
    ref = x + pe[None]
    assert out.shape == (B, max_seq_len, model_dim), out.shape
    assert bool(jnp.all(jnp.isfinite(out)))
    assert bool(jnp.allclose(out, ref, atol=1e-6, rtol=1e-6))
    print("KERNEL_OK")
</pallas_src>

<mosaic_0001>
module attributes {stable_mosaic.version = 11 : i64} {
  func.func @_pos_enc_kernel(%arg0: i32, %arg1: i32, %arg2: memref<1x64x128xf32, #tpu.memory_space<vmem>>, %arg3: memref<64x128xf32, #tpu.memory_space<vmem>>, %arg4: memref<1x64x128xf32, #tpu.memory_space<vmem>>) attributes {dimension_semantics = [#tpu.dimension_semantics<parallel>, #tpu.dimension_semantics<parallel>], iteration_bounds = array<i64: 1, 2>, scalar_prefetch = 0 : i64, scratch_operands = 0 : i64, tpu.core_type = #tpu.core_type<tc>, window_params = [{transform_indices = @transform_0, window_bounds = array<i64: 1, 64, 128>}, {transform_indices = @transform_1, window_bounds = array<i64: 64, 128>}, {transform_indices = @transform_2, window_bounds = array<i64: 1, 64, 128>}]} {
    %c0 = arith.constant 0 : index
    %c0_0 = arith.constant 0 : index
    %c0_1 = arith.constant 0 : index
    %0 = vector.load %arg2[%c0, %c0_0, %c0_1] : memref<1x64x128xf32, #tpu.memory_space<vmem>>, vector<1x64x128xf32>
    %c0_2 = arith.constant 0 : index
    %c0_3 = arith.constant 0 : index
    %1 = vector.load %arg3[%c0_2, %c0_3] : memref<64x128xf32, #tpu.memory_space<vmem>>, vector<64x128xf32>
    %2 = vector.shape_cast %1 : vector<64x128xf32> to vector<1x64x128xf32>
    %3 = arith.addf %0, %2 : vector<1x64x128xf32>
    %c0_4 = arith.constant 0 : index
    %c0_5 = arith.constant 0 : index
    %c0_6 = arith.constant 0 : index
    %4 = vector.load %arg4[%c0_4, %c0_5, %c0_6] : memref<1x64x128xf32, #tpu.memory_space<vmem>>, vector<1x64x128xf32>
    tpu.vector_store %arg4[%c0_4, %c0_5, %c0_6], %3 {strides = array<i32>} : memref<1x64x128xf32, #tpu.memory_space<vmem>>, vector<1x64x128xf32>,
    return
  }
  func.func @transform_0(%arg0: i32, %arg1: i32) -> (i32, i32, i32) {
    %c0_i32 = arith.constant 0 : i32
    %c0_i32_0 = arith.constant 0 : i32
    return %arg1, %arg0, %c0_i32 : i32, i32, i32
  }
  func.func @transform_1(%arg0: i32, %arg1: i32) -> (i32, i32) {
    %c0_i32 = arith.constant 0 : i32
    %c0_i32_0 = arith.constant 0 : i32
    return %arg0, %c0_i32 : i32, i32
  }
  func.func @transform_2(%arg0: i32, %arg1: i32) -> (i32, i32, i32) {
    %c0_i32 = arith.constant 0 : i32
    %c0_i32_0 = arith.constant 0 : i32
    return %arg1, %arg0, %c0_i32 : i32, i32, i32
  }
}

</mosaic_0001>

<bundles_post_ra>
// kernel: positional_encoder_forward.1
= control target key start
LH: loop header
LB: loop body
LE: loop exit
PB: predicated region body
PF: predicated region fallthrough
CT: control target
= control target key end

     0   :  { %7 = vsyncpa [#allocation3], 0  ;;  %s808_s0 = inlined_call_operand.hbm [shape: f32[2,64,128], index: 0, kind: input, shape index: {}]   ;;  %s809_s1 = inlined_call_operand.hbm [shape: f32[64,128], index: 1, kind: input, shape index: {}]   ;;  %s810_s2 = inlined_call_operand.hbm [shape: f32[2,64,128], index: 2, kind: output, shape index: {}]  }
   0x1   :  { %9 = vsyncpa [#allocation3 + $0x1], 0 }
   0x2   :  { %10 = vsyncpa [#allocation6], 0 }
   0x3   :  { %11 = vsyncpa [#allocation4], 0 }
   0x4   :  { %13 = vsyncpa [#allocation4 + $0x1], 0  ;;  %s611_s9 = smov 0   ;;  %s613_s10 = smov 0  }
   0x5   :  { %s615_s11 = smov 0   ;;  %s617_s12 = smov 0  }
   0x6   :  { %s619_s13 = smov 0   ;;  %s621_s14 = smov 0  }
   0x7 LB: > { %s353_s15 = sadd.s32 4294967295, %s587_s14   ;;  %s354_s16 = sadd.s32 4294967294, %s587_s14   ;;  %s587_s14 = sphi %s621_s14, %s19_s14   ;;  %s583_s13 = sphi %s619_s13, %s830_s13   ;;  %s579_s12 = sphi %s617_s12, %s829_s12   ;;  %s575_s11 = sphi %s615_s11, %s828_s11   ;;  %s571_s10 = sphi %s613_s10, %s827_s10   ;;  %s567_s9 = sphi %s611_s9, %s826_s9  }
   0x8   : > { %p53_p0 = scmp.ne.s32.totalorder %s571_s10, %s567_s9  ;;  %p645_p1 = scmp.eq.s32.totalorder %s353_s15, 0 }
   0x9   : > { %p649_p2 = scmp.eq.s32.totalorder %s353_s15, 1  ;;  %p111_p3 = scmp.eq.s32.totalorder %s354_s16, 1 }
   0xa   : > { %p655_p4 = por %p645_p1, %p53_p0  ;;  %p355_p5 = scmp.ge.s32.totalorder %s587_s14, 1 }
   0xb   : > { %p660_p6 = por %p111_p3, %p53_p0  ;;  %p118_p7 = scmp.lt.s32.totalorder %s587_s14, 3 }
   0xc   : > { %s815_s19 = scalar_select %p655_p4, 1, 0 }
   0xd   : > { %s816_s20 = scalar_select %p660_p6, 1, 0 }
   0xe   : > { %p665_p8 = pnand %p355_p5, %p118_p7  ;;  %s589_s22 = smov [#allocation5]  }
   0xf   : > { %s133_s23 = sshll.u32 %s589_s22, 4  ;;  %s28_s25 = sadd.s32 1, %s583_s13  ;;  %s134_s23 = int_to_ptr.vmem [resolvable:$true] %s133_s23 }
  0x10   : > { %p380_p9 = pneg %p665_p8  ;;  %s460_s26 = scalar_lea.vmem %s134_s23, 1024 }
  0x11   : > { %p461_p13 = scmp.ne.s32.totalorder %s134_s23, %s460_s26  ;;  %p468_p5 = scmp.lt.s32.totalorder %s134_s23, %s134_s23 }
  0x12   : > { %p674_p11 = pnand %p380_p9, %p645_p1  ;;  %p469_p7 = scmp.lt.s32.totalorder %s460_s26, %s460_s26 }
  0x14   : > { %p451_p12 = pneg %p674_p11  ;;  %p470_p6 = por %p469_p7, %p468_p5 }
  0x16   : > { %p463_p0 = pnand %p461_p13, %p451_p12 }
  0x18   : > { %p464_p3 = pneg %p463_p0 }
  0x1a   : > { %p471_p4 = pnand %p470_p6, %p464_p3 }
  0x1c   : > { %474 = shalt.err (!%p471_p4)
}
  0x1d   : > { %s812_s27 = smov 128   ;;  %s591_s28 = smov 8  }
  0x1e   : > { %383 = dma.hbm_to_vmem [thread:$0]  (!%p674_p11), %s809_s1, 1024, %s134_s23, [#allocation6], %s812_s27, %s812_s27, %s591_s28  }
  0x1f   : > { %p29_p4 = scmp.ge.s32.totalorder %s28_s25, 2  ;;  %s40_s3 = sadd.s32 1, %s575_s11 }
  0x20   : > { %p47_p6 = scmp.ne.s32.totalorder %s575_s11, %s571_s10  ;;  %p48_p9 = scmp.eq.s32.totalorder %s587_s14, 0 }
  0x21   : > { %s832_s25 = smov (%p29_p4, %s28_s25), 0  ;;  %p393_p0 = scmp.lt.s32.totalorder %s587_s14, 2 }
  0x22   : > { %p695_p12 = por %p48_p9, %p47_p6  ;;  %p701_p13 = por %p649_p2, %p47_p6 }
  0x23   : > { %s35_s6 = ssub.s32 %s583_s13, %s832_s25  ;;  %s147_s7 = sand.u32 1, %s575_s11  }
  0x24   : > { %p38_p11 = scmp.eq.s32.totalorder %s35_s6, 0  ;;  %s358_s8 = sshll.u32 %s147_s7, 6 }
  0x25   : > { %s370_s16 = sshll.u32 %s583_s13, 10  ;;  %s151_s26 = scalar_lea.vmem [#allocation2], %s358_s8 }
  0x26   : > { %s710_s15 = scalar_select %p38_p11, %s575_s11, %s40_s3  }
  0x27   : > { %s159_s24 = scalar_lea.hbm %s808_s0, %s370_s16  ;;  %s160_s29 = sshll.u32 %s151_s26, 4  ;;  %s161_s29 = int_to_ptr.vmem [resolvable:$true] %s160_s29 }
  0x28   : > { %p718_p2 = pnand %p393_p0, %p695_p12  ;;  %s148_s30 = scalar_lea.sflag [#allocation3], %s147_s7 }
  0x29   : > { %s488_s6 = scalar_lea.vmem %s161_s29, 1024  ;;  %s592_s3 = smov [#allocation2]  }
  0x2a   : > { %p477_p3 = pneg %p718_p2  ;;  %p489_p5 = scmp.ne.s32.totalorder %s161_s29, %s488_s6 }
  0x2b   : > { %s493_s27 = sshll.u32 %s592_s3, 4  ;;  %s494_s27 = int_to_ptr.vmem [resolvable:$false] %s493_s27 }
  0x2c   : > { %p491_p7 = pnand %p489_p5, %p477_p3  ;;  %s495_s16 = scalar_lea.vmem %s494_s27, 2048 }
  0x2d   : > { %p496_p6 = scmp.lt.s32.totalorder %s161_s29, %s494_s27  ;;  %p497_p9 = scmp.lt.s32.totalorder %s495_s16, %s488_s6 }
  0x2e   : > { %p492_p4 = pneg %p491_p7 }
  0x2f   : > { %p498_p11 = por %p497_p9, %p496_p6 }
  0x31   : > { %p499_p10 = pnand %p498_p11, %p492_p4 }
  0x33   : > { %502 = shalt.err (!%p499_p10)
}
  0x34   : > { %s822_s4 = smov 128   ;;  %172 = sbr.rel (%p665_p8) target bundleno = 85 (0x55), region = 28 }
  0x35   : > { %387 = dma.hbm_to_vmem [thread:$0]  (!%p718_p2), %s159_s24, 1024, %s161_s29, %s148_s30, %s822_s4, %s822_s4, %s591_s28  }
  0x36   : > { %s732_s7 = sand.u32 (!%p665_p8), 1, %s571_s10   ;;  %p823_p10 = scmp.ne.s32.totalorder (!%p665_p8), %s815_s19, 0 }
  0x37   : > { %s362_s27 = sshll.u32 (!%p665_p8), %s732_s7, 6  ;;  %s175_s8 = scalar_lea.sflag (!%p665_p8), [#allocation3], %s732_s7 }
  0x38   : > { %s736_s22 = scalar_lea.vmem (!%p665_p8), [#allocation2], %s362_s27 }
  0x39   : > { %554 = dma.done.wait (%p823_p10), %s175_s8, 1024  }
  0x3a   : > { %556 = vsyncadd (%p823_p10), %s175_s8, 4294966272 }
  0x3b   : > { %558 = dma.done.wait (%p645_p1), [#allocation6], 1024  }
  0x3c   : > { %560 = vsyncadd (%p645_p1), [#allocation6], 4294966272  ;;  %v206_v0 = vld [vmem:[%s736_s22] sm:$0xff]  ;;  %v207_v2 = vld [vmem:[%s736_s22 + $0x8] sm:$0xff]  ;;  %s202_s19 = scalar_lea.vmem [#allocation7], %s362_s27  ;;  %s371_s17 = sshll.u32 %s579_s12, 10 }
  0x3d   : > { %v214_v1 = vld [vmem:[#allocation5] sm:$0xff]  ;;  %v215_v4 = vld [vmem:[#allocation5 + $0x8] sm:$0xff]  ;;  %v208_v5 = vld [vmem:[%s736_s22 + $0x10] sm:$0xff]  ;;  %s254_s21 = sshll.u32 %s202_s19, 4  ;;  %s760_s23 = scalar_lea.hbm %s810_s2, %s371_s17  ;;  %s755_s21 = int_to_ptr.vmem [resolvable:$true] %s254_s21 }
  0x3e   : > { %v222_v3 = vadd.f32 %v214_v1, %v206_v0  ;;  %v216_v6 = vld [vmem:[#allocation5 + $0x10] sm:$0xff]  ;;  %v223_v7 = vadd.f32 %v215_v4, %v207_v2  ;;  %v209_v9 = vld [vmem:[%s736_s22 + $0x18] sm:$0xff]  ;;  %v210_v11 = vld [vmem:[%s736_s22 + $0x20] sm:$0xff]  ;;  %s239_s24 = scalar_lea.sflag [#allocation4], %s732_s7  ;;  %s503_s26 = scalar_lea.vmem %s755_s21, 1024 }
  0x3f   : > { %v224_v8 = vadd.f32 %v216_v6, %v208_v5  ;;  %v217_v10 = vld [vmem:[#allocation5 + $0x18] sm:$0xff]  ;;  %v218_v13 = vld [vmem:[#allocation5 + $0x20] sm:$0xff]  ;;  %v211_v14 = vld [vmem:[%s736_s22 + $0x28] sm:$0xff]  ;;  %p504_p1 = scmp.ne.s32.totalorder %s755_s21, %s503_s26  ;;  %s593_s29 = smov [#allocation7]  }
  0x40   : > { %230 = vst [vmem:[%s202_s19] sm:$0xff] %v222_v3  ;;  %v225_v12 = vadd.f32 %v217_v10, %v209_v9  ;;  %v219_v15 = vld [vmem:[#allocation5 + $0x28] sm:$0xff]  ;;  %231 = vst [vmem:[%s202_s19 + $0x8] sm:$0xff] %v223_v7  ;;  %v226_v16 = vadd.f32 %v218_v13, %v210_v11  ;;  %v212_v18 = vld [vmem:[%s736_s22 + $0x30] sm:$0xff]  ;;  %s507_s18 = sshll.u32 %s593_s29, 4  ;;  %s508_s18 = int_to_ptr.vmem [resolvable:$false] %s507_s18 }
  0x41   : > { %232 = vst [vmem:[%s202_s19 + $0x10] sm:$0xff] %v224_v8  ;;  %v227_v17 = vadd.f32 %v219_v15, %v211_v14  ;;  %v220_v19 = vld [vmem:[#allocation5 + $0x30] sm:$0xff]  ;;  %v213_v20 = vld [vmem:[%s736_s22 + $0x38] sm:$0xff]  ;;  %p505_p8 = pnand %p504_p1, %p701_p13  ;;  %s509_s30 = scalar_lea.vmem %s508_s18, 2048 }
  0x42   : > { %233 = vst [vmem:[%s202_s19 + $0x18] sm:$0xff] %v225_v12  ;;  %v228_v21 = vadd.f32 %v220_v19, %v212_v18  ;;  %v221_v22 = vld [vmem:[#allocation5 + $0x38] sm:$0xff]  ;;  %234 = vst [vmem:[%s202_s19 + $0x20] sm:$0xff] %v226_v16  ;;  %p510_p0 = scmp.lt.s32.totalorder %s755_s21, %s508_s18  ;;  %p511_p2 = scmp.lt.s32.totalorder %s509_s30, %s503_s26 }
  0x43   : > { %235 = vst [vmem:[%s202_s19 + $0x28] sm:$0xff] %v227_v17  ;;  %v229_v23 = vadd.f32 %v221_v22, %v213_v20  ;;  %p506_p12 = pneg %p505_p8 }
  0x44   : > { %236 = vst [vmem:[%s202_s19 + $0x30] sm:$0xff] %v228_v21  ;;  %p512_p3 = por %p511_p2, %p510_p0 }
  0x45   : > { %237 = vst [vmem:[%s202_s19 + $0x38] sm:$0xff] %v229_v23 }
  0x46   : > { %p513_p5 = pnand %p512_p3, %p506_p12 }
  0x48   : > { %516 = shalt.err (!%p513_p5)
}
  0x49   : > { %s517_s6 = scalar_lea.hbm %s760_s23, 1024  ;;  %s521_s4 = scalar_lea.hbm %s810_s2, 2048 }
  0x4a   : > { %p518_p7 = scmp.ne.s32.totalorder %s760_s23, %s517_s6  ;;  %p522_p9 = scmp.lt.s32.totalorder %s760_s23, %s810_s2 }
  0x4b   : > { %p523_p11 = scmp.lt.s32.totalorder %s521_s4, %s517_s6 }
  0x4c   : > { %p519_p4 = pnand %p518_p7, %p701_p13 }
  0x4d   : > { %p524_p10 = por %p523_p11, %p522_p9 }
  0x4e   : > { %p520_p6 = pneg %p519_p4 }
  0x50   : > { %p525_p1 = pnand %p524_p10, %p520_p6 }
  0x52   : > { %528 = shalt.err (!%p525_p1)
}
  0x53   : > { %s594_s22 = smov 128   ;;  %s595_s19 = smov 8  }
  0x54   : > { %378 = dma.vmem_to_hbm [thread:$0]  (%p701_p13), %s755_s21, 1024, %s760_s23, %s239_s24, %s594_s22, %s594_s22, %s595_s19  }
  0x55 PF: > { %s269_s17 = sand.u32 1, %s567_s9   ;;  %p824_p8 = scmp.ne.s32.totalorder %s816_s20, 0 }
  0x56   : > { %p825_p12 = scmp.ge.s32.totalorder %s587_s14, 2  ;;  %s270_s12 = scalar_lea.sflag [#allocation4], %s269_s17 }
  0x58   : > { %p389_p0 = pnand %p825_p12, %p824_p8 }
  0x5a   : > { %p390_p2 = pneg %p389_p0 }
  0x5c   : > { %562 = dma.done.wait (%p390_p2), %s270_s12, 1024  }
  0x5d   : > { %564 = vsyncadd (%p390_p2), %s270_s12, 4294966272  ;;  %s19_s14 = sadd.s32 1, %s587_s14   ;;  %s826_s9 = smov %s571_s10 }
  0x5e   : > { %p16_p3 = scmp.ge.s32.totalorder %s19_s14, 4   ;;  %s827_s10 = smov %s575_s11 }
  0x5f   : > { %s828_s11 = smov %s710_s15  ;;  %s829_s12 = smov %s583_s13 }
  0x60   : > { %s830_s13 = smov %s832_s25  ;;  %18 = sbr.rel (!%p16_p3) target bundleno = 7 (0x7), region = 78 }
  0x65   :  { %275 = vsyncpa [#allocation3], 1 }
  0x66   :  { %277 = vsyncpa [#allocation3 + $0x1], 1 }
  0x67   :  { %278 = vsyncpa [#allocation6], 1 }
  0x68   :  { %279 = vsyncpa [#allocation4], 1 }
  0x69   :  { %281 = vsyncpa [#allocation4 + $0x1], 1 }

</bundles_post_ra>
